<compile_context>
chip_gen: v7x
topology: tpu7x:2x2x1
jax: 0.10.0
libtpu: 0.0.40
codegen_flags: <defaults>
</compile_context>

<pallas_src>
import functools

import jax
import jax.numpy as jnp
from jax.experimental import pallas as pl
from jax.experimental.pallas import tpu as pltpu

LANE = 128          # lane width: pad feature dims to multiples of this
TILE_B_MAX = 1024   # batch tile (amortizes ~0.35 us/step grid overhead; fits v7x VMEM)


def mlp_kernel(x_ref, w1_ref, b1_ref, w2_ref, b2_ref, o_ref):
    # First linear: [TB, D](bf16) @ [D, Hp](bf16) -> f32 accum, + bias, ReLU (VPU, fused).
    h = jnp.dot(x_ref[...], w1_ref[...], preferred_element_type=jnp.float32)
    h = jnp.maximum(h + b1_ref[...], 0.0)
    # Second linear: cast activations to bf16 for the MXU, accumulate in f32.
    out = jnp.dot(h.astype(w2_ref.dtype), w2_ref[...],
                  preferred_element_type=jnp.float32)
    o_ref[...] = (out + b2_ref[...]).astype(o_ref.dtype)


def _round_up(x, m):
    return pl.cdiv(x, m) * m


@functools.partial(jax.jit, static_argnames=("tile_b",))
def simple_classifier_forward(x, w1, b1, w2, b2, *, tile_b=TILE_B_MAX):
    """Pallas TPU forward of SimpleClassifier.

    x:  [B, D] float32
    w1: [D, 64], b1: [1, 64] (or [64])
    w2: [64, C], b2: [1, C]  (or [C])
    returns [B, C] float32
    """
    B, D = x.shape
    H = w1.shape[1]
    C = w2.shape[1]

    H_pad = _round_up(H, LANE)
    C_pad = _round_up(C, LANE)

    tile_b = min(tile_b, _round_up(B, 8))   # small batches: one 8-row-aligned tile
    B_pad = _round_up(B, tile_b)

    cdt = jnp.bfloat16  # matmul operand dtype (halves HBM traffic on the x stream)

    # Zero-pad to lane-dense shapes (zero pad cols/rows are exact: ReLU(0)=0, 0-rows of w2
    # contribute nothing), and pad the batch to a tile multiple.
    x_p = jnp.pad(x.astype(cdt), ((0, B_pad - B), (0, 0)))
    w1_p = jnp.pad(w1.astype(cdt), ((0, 0), (0, H_pad - H)))
    b1_p = jnp.pad(b1.reshape(1, -1).astype(jnp.float32), ((0, 0), (0, H_pad - H)))
    w2_p = jnp.pad(w2.astype(cdt), ((0, H_pad - H), (0, C_pad - C)))
    b2_p = jnp.pad(b2.reshape(1, -1).astype(jnp.float32), ((0, 0), (0, C_pad - C)))

    grid = (B_pad // tile_b,)

    out = pl.pallas_call(
        mlp_kernel,
        out_shape=jax.ShapeDtypeStruct((B_pad, C_pad), jnp.float32),
        grid=grid,
        in_specs=[
            pl.BlockSpec((tile_b, D), lambda i: (i, 0)),      # streamed per step
            pl.BlockSpec((D, H_pad), lambda i: (0, 0)),       # weights resident
            pl.BlockSpec((1, H_pad), lambda i: (0, 0)),
            pl.BlockSpec((H_pad, C_pad), lambda i: (0, 0)),
            pl.BlockSpec((1, C_pad), lambda i: (0, 0)),
        ],
        out_specs=pl.BlockSpec((tile_b, C_pad), lambda i: (i, 0)),
        compiler_params=pltpu.CompilerParams(
            dimension_semantics=("parallel",),     # megacore sharding on v7x
            vmem_limit_bytes=32 * 1024 * 1024,     # explicit, safe on v7x's 64 MiB VMEM
        ),
    )(x_p, w1_p, b1_p, w2_p, b2_p)

    return out[:B, :C]


def init_params(key, input_dim, num_classes=10, hidden=64):
    """Deterministic init mimicking PyTorch's default Linear init (uniform +-1/sqrt(fan_in))."""
    k1, k2, k3, k4 = jax.random.split(key, 4)
    bound1 = 1.0 / jnp.sqrt(input_dim)
    w1 = jax.random.uniform(k1, (input_dim, hidden), jnp.float32, -bound1, bound1)
    b1 = jax.random.uniform(k2, (1, hidden), jnp.float32, -bound1, bound1)
    bound2 = 1.0 / jnp.sqrt(hidden)
    w2 = jax.random.uniform(k3, (hidden, num_classes), jnp.float32, -bound2, bound2)
    b2 = jax.random.uniform(k4, (1, num_classes), jnp.float32, -bound2, bound2)
    return w1, b1, w2, b2


if __name__ == "__main__":
    key = jax.random.PRNGKey(0)
    kx, kp = jax.random.split(key)

    batch = 8
    input_dim = 32
    num_classes = 10

    x = jax.random.normal(kx, (batch, input_dim), jnp.float32)
    w1, b1, w2, b2 = init_params(kp, input_dim, num_classes)

    out = simple_classifier_forward(x, w1, b1, w2, b2)
    out = jax.block_until_ready(out)

    # Reference in plain f32 JAX (same math as the PyTorch module).
    ref = jnp.maximum(x @ w1 + b1, 0.0) @ w2 + b2
    assert out.shape == (batch, num_classes)
    # bf16 matmul operands with f32 accumulation -> loosen tolerance vs. the f32 ref.
    assert jnp.allclose(out, ref, atol=5e-2, rtol=5e-2), (
        f"max abs err {jnp.max(jnp.abs(out - ref))}")

    print("KERNEL_OK")
</pallas_src>

<mosaic_0001>
module attributes {stable_mosaic.version = 11 : i64} {
  func.func @mlp_kernel(%arg0: i32, %arg1: memref<8x32xbf16, #tpu.memory_space<vmem>>, %arg2: memref<32x128xbf16, #tpu.memory_space<vmem>>, %arg3: memref<1x128xf32, #tpu.memory_space<vmem>>, %arg4: memref<128x128xbf16, #tpu.memory_space<vmem>>, %arg5: memref<1x128xf32, #tpu.memory_space<vmem>>, %arg6: memref<8x128xf32, #tpu.memory_space<vmem>>) attributes {dimension_semantics = [#tpu.dimension_semantics<parallel>], iteration_bounds = array<i64: 1>, scalar_prefetch = 0 : i64, scratch_operands = 0 : i64, tpu.core_type = #tpu.core_type<tc>, window_params = [{transform_indices = @transform_0, window_bounds = array<i64: 8, 32>}, {pipeline_mode = #tpu.pipeline_mode<synchronous>, transform_indices = @transform_1, window_bounds = array<i64: 32, 128>}, {pipeline_mode = #tpu.pipeline_mode<synchronous>, transform_indices = @transform_2, window_bounds = array<i64: 1, 128>}, {pipeline_mode = #tpu.pipeline_mode<synchronous>, transform_indices = @transform_3, window_bounds = array<i64: 128, 128>}, {pipeline_mode = #tpu.pipeline_mode<synchronous>, transform_indices = @transform_4, window_bounds = array<i64: 1, 128>}, {transform_indices = @transform_5, window_bounds = array<i64: 8, 128>}]} {
    %c0 = arith.constant 0 : index
    %c0_0 = arith.constant 0 : index
    %0 = vector.load %arg1[%c0, %c0_0] : memref<8x32xbf16, #tpu.memory_space<vmem>>, vector<8x32xbf16>
    %c0_1 = arith.constant 0 : index
    %c0_2 = arith.constant 0 : index
    %1 = vector.load %arg2[%c0_1, %c0_2] : memref<32x128xbf16, #tpu.memory_space<vmem>>, vector<32x128xbf16>
    %cst = arith.constant dense<0.000000e+00> : vector<8x128xf32>
    %2 = tpu.matmul %0, %1, %cst {dimension_numbers = #tpu.dot_dimension_numbers<[1], [0], [0], [1], [0, 0, 1, 1], [], []>} : vector<8x32xbf16>, vector<32x128xbf16>, vector<8x128xf32> -> vector<8x128xf32>
    %c0_3 = arith.constant 0 : index
    %c0_4 = arith.constant 0 : index
    %3 = vector.load %arg3[%c0_3, %c0_4] : memref<1x128xf32, #tpu.memory_space<vmem>>, vector<1x128xf32>
    %4 = vector.broadcast %3 : vector<1x128xf32> to vector<8x128xf32>
    %5 = arith.addf %2, %4 : vector<8x128xf32>
    %cst_5 = arith.constant 0.000000e+00 : f32
    %6 = vector.broadcast %cst_5 : f32 to vector<8x128xf32>
    %7 = arith.maximumf %5, %6 : vector<8x128xf32>
    %8 = arith.truncf %7 : vector<8x128xf32> to vector<8x128xbf16>
    %c0_6 = arith.constant 0 : index
    %c0_7 = arith.constant 0 : index
    %9 = vector.load %arg4[%c0_6, %c0_7] : memref<128x128xbf16, #tpu.memory_space<vmem>>, vector<128x128xbf16>
    %cst_8 = arith.constant dense<0.000000e+00> : vector<8x128xf32>
    %10 = tpu.matmul %8, %9, %cst_8 {dimension_numbers = #tpu.dot_dimension_numbers<[1], [0], [0], [1], [0, 0, 1, 1], [], []>} : vector<8x128xbf16>, vector<128x128xbf16>, vector<8x128xf32> -> vector<8x128xf32>
    %c0_9 = arith.constant 0 : index
    %c0_10 = arith.constant 0 : index
    %11 = vector.load %arg5[%c0_9, %c0_10] : memref<1x128xf32, #tpu.memory_space<vmem>>, vector<1x128xf32>
    %12 = vector.broadcast %11 : vector<1x128xf32> to vector<8x128xf32>
    %13 = arith.addf %10, %12 : vector<8x128xf32>
    %c0_11 = arith.constant 0 : index
    %c0_12 = arith.constant 0 : index
    %14 = vector.load %arg6[%c0_11, %c0_12] : memref<8x128xf32, #tpu.memory_space<vmem>>, vector<8x128xf32>
    tpu.vector_store %arg6[%c0_11, %c0_12], %13 {strides = array<i32>} : memref<8x128xf32, #tpu.memory_space<vmem>>, vector<8x128xf32>,
    return
  }
  func.func @transform_0(%arg0: i32) -> (i32, i32) {
    %c0_i32 = arith.constant 0 : i32
    %c0_i32_0 = arith.constant 0 : i32
    return %arg0, %c0_i32 : i32, i32
  }
  func.func @transform_1(%arg0: i32) -> (i32, i32) {
    %c0_i32 = arith.constant 0 : i32
    %c0_i32_0 = arith.constant 0 : i32
    %c0_i32_1 = arith.constant 0 : i32
    return %c0_i32, %c0_i32_0 : i32, i32
  }
  func.func @transform_2(%arg0: i32) -> (i32, i32) {
    %c0_i32 = arith.constant 0 : i32
    %c0_i32_0 = arith.constant 0 : i32
    %c0_i32_1 = arith.constant 0 : i32
    return %c0_i32, %c0_i32_0 : i32, i32
  }
  func.func @transform_3(%arg0: i32) -> (i32, i32) {
    %c0_i32 = arith.constant 0 : i32
    %c0_i32_0 = arith.constant 0 : i32
    %c0_i32_1 = arith.constant 0 : i32
    return %c0_i32, %c0_i32_0 : i32, i32
  }
  func.func @transform_4(%arg0: i32) -> (i32, i32) {
    %c0_i32 = arith.constant 0 : i32
    %c0_i32_0 = arith.constant 0 : i32
    %c0_i32_1 = arith.constant 0 : i32
    return %c0_i32, %c0_i32_0 : i32, i32
  }
  func.func @transform_5(%arg0: i32) -> (i32, i32) {
    %c0_i32 = arith.constant 0 : i32
    %c0_i32_0 = arith.constant 0 : i32
    return %arg0, %c0_i32 : i32, i32
  }
}

</mosaic_0001>

<bundles_post_ra>
// kernel: simple_classifier_forward.1
= control target key start
LH: loop header
LB: loop body
LE: loop exit
PB: predicated region body
PF: predicated region fallthrough
CT: control target
= control target key end

     0   :  { %v308_v1 = vmov 0.0   ;;  %vm309_vm0 = vmmov 0   ;;  %vm46_vm1 = vcmask 261120   ;;  %s392_s0 = inlined_call_operand.vmem [shape: bf16[8,32], index: 0, kind: input, shape index: {}]   ;;  %s393_s1 = inlined_call_operand.vmem [shape: bf16[32,128], index: 1, kind: input, shape index: {}]   ;;  %s394_s2 = inlined_call_operand.vmem [shape: f32[1,128], index: 2, kind: input, shape index: {}]   ;;  %s395_s3 = inlined_call_operand.vmem [shape: bf16[128,128], index: 3, kind: input, shape index: {}]   ;;  %s396_s4 = inlined_call_operand.vmem [shape: f32[1,128], index: 4, kind: input, shape index: {}]   ;;  %s397_s5 = inlined_call_operand.hbm [shape: f32[8,128], index: 5, kind: output, shape index: {}]  }
   0x1   :  { %v274_v0 = vld [vmem:[%s393_s1] sm:$0xff]   ;;  %243 = vmatprep.subr.bf16.mxu0 %v308_v1  ;;  %251 = vmatprep.subr.bf16.mxu1 %v308_v1  ;;  %v275_v2 = vld [vmem:[%s393_s1 + $0x8] sm:$0xff]   ;;  %v278_v6 = vld [vmem:[%s395_s3 + $0x10] sm:$0xff]  }
   0x2   :  { %244 = vmatpush3.bf16.msra.mxu0 %v274_v0  ;;  %247 = vmatprep.mubr.msk.bf16.mxu0 %vm309_vm0, %v308_v1  ;;  %v276_v3 = vld [vmem:[%s395_s3] sm:$0xff]   ;;  %v277_v4 = vld [vmem:[%s395_s3 + $0x8] sm:$0xff]  }
   0x3   :  { %245 = vmatprep.subr.bf16.mxu0 %v308_v1  ;;  %267 = vmatprep.mubr.msk.bf16.mxu1 %vm309_vm0, %v308_v1  ;;  %v22_v5 = vld [vmem:[%s392_s0] sm:$0xf] }
   0x4   :  { %252 = vmatpush3.bf16.msra.mxu1 %v276_v3 }
   0x5   :  { %253 = vmatprep.subr.bf16.mxu1 %v308_v1 }
   0x6   :  { %246 = vmatpush3.bf16.msra.mxu0 %v275_v2 }
   0x8   :  { %254 = vmatpush3.bf16.msra.mxu1 %v277_v4 }
   0x9   :  { %248 = vmatmul.mubr.msk.bf16.vlgmr.msra.gmra.mrb[0].mxu0 %vm46_vm1, %v22_v5  ;;  %255 = vmatprep.subr.bf16.mxu1 %v308_v1 }
   0xa   :  { %10 = vsyncpa [#allocation3], 0  ;;  %v279_v7 = vld [vmem:[%s395_s3 + $0x18] sm:$0xff]   ;;  %v280_v8 = vld [vmem:[%s395_s3 + $0x20] sm:$0xff]   ;;  %s310_s17 = smov [#allocation2]  }
   0xb   :  { %v281_v9 = vld [vmem:[%s395_s3 + $0x28] sm:$0xff]   ;;  %v282_v10 = vld [vmem:[%s395_s3 + $0x30] sm:$0xff]   ;;  %v283_v11 = vld [vmem:[%s395_s3 + $0x38] sm:$0xff]   ;;  %s210_s18 = sshll.u32 %s310_s17, 4  ;;  %s211_s18 = int_to_ptr.vmem [resolvable:$true] %s210_s18 }
   0xc   :  { %256 = vmatpush3.bf16.msra.mxu1 %v278_v6  ;;  %v218_v12 = vld [vmem:[%s394_s2] ss:$0 sm:$0xff]  ;;  %s284_s2 = scalar_lea.vmem %s211_s18, 128  ;;  %p289_p1 = scmp.lt.s32.totalorder %s211_s18, %s211_s18 }
   0xd   :  { %257 = vmatprep.subr.bf16.mxu1 %v308_v1  ;;  %v222_v20 = vld [vmem:[%s396_s4] ss:$0 sm:$0xff]  ;;  %p285_p0 = scmp.ne.s32.totalorder %s211_s18, %s284_s2  ;;  %p290_p2 = scmp.lt.s32.totalorder %s284_s2, %s284_s2 }
   0xf   :  { %p291_p3 = por %p290_p2, %p289_p1 }
  0x10   :  { %258 = vmatpush3.bf16.msra.mxu1 %v279_v7 }
  0x11   :  { %259 = vmatprep.subr.bf16.mxu1 %v308_v1  ;;  %p292_p4 = pnand %p291_p3, %p285_p0 }
  0x14   :  { %260 = vmatpush3.bf16.msra.mxu1 %v280_v8 }
  0x15   :  { %261 = vmatprep.subr.bf16.mxu1 %v308_v1 }
  0x18   :  { %262 = vmatpush3.bf16.msra.mxu1 %v281_v9 }
  0x19   :  { %263 = vmatprep.subr.bf16.mxu1 %v308_v1 }
  0x1c   :  { %264 = vmatpush3.bf16.msra.mxu1 %v282_v10 }
  0x1d   :  { %265 = vmatprep.subr.bf16.mxu1 %v308_v1 }
  0x20   :  { %266 = vmatpush3.bf16.msra.mxu1 %v283_v11 }
  0xdc   :  { %v84_v13 = vpop.f32.mrb[0].mxu0 }
  0xdd   :  { %v85_v14 = vadd.f32 %v218_v12, %v84_v13  ;;  %v249_v15 = vpop.f32.mrb[1].mxu0 }
  0xde   :  { %v87_v16 = vpop.f32.mrb[2].mxu0 }
  0xdf   :  { %v90_v17 = vmax.f32 %v85_v14, 0.0  ;;  %v250_v18 = vpop.f32.mrb[3].mxu0 }
  0xe1   :  { %v91_v19 = vpack.c.bf16 %v90_v17, %v90_v17 }
  0xe3   :  { %268 = vmatmul.mubr.bf16.vlgmr.msra.gmra.mrb[0].mxu1 %v91_v19 }
 0x1b6   :  { %v197_v21 = vpop.f32.mrb[0].mxu1 }
 0x1b7   :  { %v198_v22 = vadd.f32 %v222_v20, %v197_v21  ;;  %v269_v23 = vpop.f32.mrb[1].mxu1 }
 0x1b8   :  { %v200_v24 = vpop.f32.mrb[2].mxu1 }
 0x1b9   :  { %203 = vst [vmem:[#allocation2] sm:$0xff] %v198_v22  ;;  %v270_v25 = vpop.f32.mrb[3].mxu1 }
 0x1ba   :  { %295 = shalt.err (!%p292_p4)
}
 0x1bb   :  { %s296_s4 = scalar_lea.hbm %s397_s5, 128 }
 0x1bc   :  { %p297_p5 = scmp.ne.s32.totalorder %s397_s5, %s296_s4  ;;  %p300_p6 = scmp.lt.u32.totalorder %s296_s4, %s397_s5 }
 0x1be   :  { %p302_p7 = pnand %p300_p6, %p297_p5 }
 0x1c0   :  { %305 = shalt.err (!%p302_p7)
}
 0x1c1   :  { %213 = dma.vmem_to_hbm [thread:$0]  %s211_s18, 128, %s397_s5, [#allocation3]  }
 0x1c2   :  { %306 = dma.done.wait [#allocation3], 128  }
 0x1c3   :  { %307 = vsyncadd [#allocation3], 4294967168 }
 0x1c4   :  { %217 = vsyncpa [#allocation3], 1 }

</bundles_post_ra>
